<compile_context>
chip_gen: v5e
topology: v5e:2x2
jax: 0.10.0
libtpu: 0.0.40
codegen_flags: <defaults>
</compile_context>

<pallas_src>
import jax
import jax.numpy as jnp
from jax import lax
from jax.experimental import pallas as pl
from jax.experimental.pallas import tpu as pltpu


# ---------------------------------------------------------------------------
# Hardware queries
# ---------------------------------------------------------------------------
def _vmem_capacity_bytes():
    try:
        info = pltpu.get_tpu_info()
        for name in ("vmem_capacity_bytes", "vmem_size_bytes", "vmem_bytes"):
            val = getattr(info, name, None)
            if val:
                return int(val)
    except Exception:
        pass
    return 64 * 1024 * 1024          # conservative fallback (v7x per-TensorCore)


def _supports_bf16_eup():
    """bf16 EUP/VPU exists on v6e/v7x; not on v5e and older."""
    try:
        kind = jax.devices()[0].device_kind.lower()
    except Exception:
        return False
    return not any(tag in kind for tag in ("v2", "v3", "v4", "v5"))


# ---------------------------------------------------------------------------
# Kernel factory (single-pass and flash/online-softmax variants)
# ---------------------------------------------------------------------------
def _make_kernel(*, s, tq, tk, vc_eff, fold_w, single_pass, exp_dtype,
                 approx_recip):
    """vc_eff = Cout when the W conv is folded into the values, else Vc.
    Value scratch has vc_eff+1 rows; the last row is all-ones so the PV matmul
    also produces the softmax denominator (acc/pv last row == l)."""

    def kernel(*refs):
        if fold_w:
            (x_ref, wk_ref, bk_ref, wv_ref, bv_ref, bw_ref,
             o_ref, kq_ref, v_ref, *state) = refs
            ww_ref = None
        else:
            (x_ref, wk_ref, bk_ref, wv_ref, bv_ref, ww_ref, bw_ref,
             o_ref, kq_ref, v_ref, *state) = refs

        qi = pl.program_id(1)
        q_off = pl.multiple_of(qi * tq, tq)

        def project():
            # 1x1 convs as channel matmuls over the full sequence.  BN, the
            # similarity scale and (optionally) W are pre-folded in the
            # wrapper.  Recomputed per grid step -> batch and q-tile axes stay
            # safe to mark "parallel" (megacore); cost is O(S*C*(Kc+Vc')).
            x = x_ref[0]                                              # (C, S)
            kq = jnp.dot(wk_ref[...], x,
                         preferred_element_type=jnp.float32) + bk_ref[...]
            kq_ref[...] = jnp.maximum(kq, 0.0).astype(kq_ref.dtype)   # (Kc, S)
            v = jnp.dot(wv_ref[...], x,
                        preferred_element_type=jnp.float32) + bv_ref[...]
            v_ref[0:vc_eff, :] = v.astype(v_ref.dtype)                # (Vc', S)
            v_ref[vc_eff:vc_eff + 1, :] = jnp.ones((1, s), v_ref.dtype)

        def finalize(pv):
            # pv: (vc_eff + 1, TQ) f32; last row is the softmax denominator l.
            inv_l = pl.reciprocal(pv[vc_eff:vc_eff + 1, :], approx=approx_recip)
            ctx = pv[0:vc_eff, :] * inv_l                             # (Vc', TQ)
            if fold_w:
                out = ctx + bw_ref[...]                               # W folded
            else:
                out = jnp.dot(ww_ref[...], ctx,
                              preferred_element_type=jnp.float32) + bw_ref[...]
            o_ref[0] = out.astype(o_ref.dtype)

        if single_pass:
            # Whole softmax row in VMEM: no online-softmax bookkeeping.
            project()
            q = kq_ref[:, pl.ds(q_off, tq)]                           # (Kc, TQ)
            k = kq_ref[...]                                           # (Kc, S)
            sim = lax.dot_general(k, q, (((0,), (0,)), ((), ())),
                                  preferred_element_type=jnp.float32)  # (S, TQ)
            m = jnp.max(sim, axis=0, keepdims=True)
            p = jnp.exp((sim - m).astype(exp_dtype))
            pv = jnp.dot(v_ref[...], p.astype(v_ref.dtype),
                         preferred_element_type=jnp.float32)           # (Vc'+1, TQ)
            finalize(pv)
        else:
            m_ref, acc_ref = state
            ki = pl.program_id(2)
            nk = pl.num_programs(2)

            @pl.when(ki == 0)
            def _init():
                project()
                m_ref[...] = jnp.full_like(m_ref, -jnp.inf)
                acc_ref[...] = jnp.zeros_like(acc_ref)

            k_off = pl.multiple_of(ki * tk, tk)
            q = kq_ref[:, pl.ds(q_off, tq)]                           # (Kc, TQ)
            k = kq_ref[:, pl.ds(k_off, tk)]                           # (Kc, TK)
            vv = v_ref[:, pl.ds(k_off, tk)]                           # (Vc'+1, TK)

            sim = lax.dot_general(k, q, (((0,), (0,)), ((), ())),
                                  preferred_element_type=jnp.float32)  # (TK, TQ)
            m_prev = m_ref[...]
            m_new = jnp.maximum(m_prev, jnp.max(sim, axis=0, keepdims=True))
            alpha = jnp.exp(m_prev - m_new)                           # (1, TQ) f32
            p = jnp.exp((sim - m_new).astype(exp_dtype))
            pv = jnp.dot(vv, p.astype(vv.dtype),
                         preferred_element_type=jnp.float32)           # (Vc'+1, TQ)
            acc_ref[...] = alpha * acc_ref[...] + pv                  # l folded in
            m_ref[...] = m_new

            @pl.when(ki == nk - 1)
            def _fin():
                finalize(acc_ref[...])

    return kernel


# ---------------------------------------------------------------------------
# Wrapper
# ---------------------------------------------------------------------------
def _tile_candidates(s, cap):
    cands = [t for t in (2048, 1024, 512, 256, 128) if t <= min(cap, s) and s % t == 0]
    return cands or [s]


def _fold_params(raw, key_channels, *, fold_w, eps=1e-5):
    """Fold inference BN + key_channels**-0.5 into f_key, optionally W into f_value."""
    hp = lax.Precision.HIGHEST
    bn_scale = raw["gamma"] / jnp.sqrt(raw["running_var"] + eps)          # (Kc,)
    qk_scale = float(key_channels) ** -0.25   # quarter power on q AND k (q == k)
    wk = (qk_scale * bn_scale)[:, None] * raw["wk"]                       # (Kc, C)
    bk = qk_scale * (bn_scale * (raw["bk"] - raw["running_mean"]) + raw["beta"])
    out = dict(wk=wk.astype(jnp.float32),
               bk=bk[:, None].astype(jnp.float32),
               bw=raw["bw"][:, None].astype(jnp.float32))
    if fold_w:
        # out = Ww @ (softmax(sim) @ V) + bw == softmax(sim) @ (Ww@V) + bw
        out["wv"] = jnp.dot(raw["ww"], raw["wv"], precision=hp).astype(jnp.float32)
        out["bv"] = jnp.dot(raw["ww"], raw["bv"], precision=hp)[:, None].astype(jnp.float32)
        out["ww"] = None
    else:
        out["wv"] = raw["wv"].astype(jnp.float32)
        out["bv"] = raw["bv"][:, None].astype(jnp.float32)
        out["ww"] = raw["ww"].astype(jnp.float32)
    return out


def self_attention_block_2d(x_nchw, raw_params, *, key_channels,
                            matmul_dtype=jnp.bfloat16,
                            q_tile=None, kv_tile=None):
    """Pallas forward.  x_nchw: (N, C, H, W) float32 -> (N, Cout, H, W)."""
    N, C, H, W = x_nchw.shape
    S = H * W
    Cout = raw_params["ww"].shape[0]
    Vc = raw_params["wv"].shape[0]
    fold_w = Cout <= Vc
    p = _fold_params(raw_params, key_channels, fold_w=fold_w)
    wk, bk, wv, bv, ww, bw = p["wk"], p["bk"], p["wv"], p["bv"], p["ww"], p["bw"]
    Kc = wk.shape[0]
    vc_eff = wv.shape[0]          # Cout if folded, else Vc
    Vp = vc_eff + 1               # + ones row for the l fold

    mm_dtype = jnp.dtype(matmul_dtype)
    bf16_path = mm_dtype == jnp.dtype(jnp.bfloat16)
    x_dtype = mm_dtype if bf16_path else jnp.dtype(jnp.float32)
    exp_dtype = jnp.bfloat16 if (bf16_path and _supports_bf16_eup()) else jnp.float32
    approx_recip = bf16_path

    # NCHW -> (N, C, S): a free reshape; S stays on the lane axis end-to-end.
    x_ncs = x_nchw.reshape(N, C, S).astype(x_dtype)

    vmem_cap = _vmem_capacity_bytes()
    budget = int(0.75 * vmem_cap)

    def vmem_need(tq, tk):
        f32 = 4
        io = 2 * C * S * x_dtype.itemsize + 2 * Cout * tq * f32
        w_elems = wk.size + bk.size + wv.size + bv.size + bw.size \
            + (0 if fold_w else ww.size)
        scratch = (Kc + Vp) * S * mm_dtype.itemsize + (Vp + 1) * tq * f32
        live = tk * tq * (f32 + jnp.dtype(exp_dtype).itemsize)    # sim + p
        return io + 2 * f32 * w_elems + scratch + live

    # ---- q tile: big, 128/256-aligned, and >=2 tiles when N == 1 (v7x TCs) --
    if q_tile is not None:
        TQ = q_tile
    else:
        cands = _tile_candidates(S, 1024)
        TQ = cands[0]
        if N == 1:
            smaller = [t for t in cands if t <= S // 2]
            if smaller:
                TQ = smaller[0]
    # ---- kv tile: single-pass (TK = S) when it fits the VMEM budget ---------
    if kv_tile is not None:
        TK = kv_tile
    elif vmem_need(TQ, S) <= budget:
        TK = S
    else:
        TK = None
        for t in _tile_candidates(S, 2048):
            if vmem_need(TQ, t) <= budget:
                TK = t
                break
        if TK is None:
            TK = _tile_candidates(S, 2048)[-1]
    assert S % TQ == 0 and S % TK == 0, (S, TQ, TK)
    nq, nk = S // TQ, S // TK
    single_pass = nk == 1

    vmem_limit = int(min(max(2 * vmem_need(TQ, TK), 32 * 1024 * 1024),
                         int(0.9 * vmem_cap)))

    kernel = _make_kernel(s=S, tq=TQ, tk=TK, vc_eff=vc_eff, fold_w=fold_w,
                          single_pass=single_pass, exp_dtype=exp_dtype,
                          approx_recip=approx_recip)

    if single_pass:
        grid = (N, nq)
        x_map = lambda b, qi: (b, 0, 0)
        w_map = lambda b, qi: (0, 0)
        out_map = lambda b, qi: (b, 0, qi)
        dim_sem = ("parallel", "parallel")
        state_scratch = []
    else:
        grid = (N, nq, nk)
        x_map = lambda b, qi, ki: (b, 0, 0)
        w_map = lambda b, qi, ki: (0, 0)
        out_map = lambda b, qi, ki: (b, 0, qi)
        dim_sem = ("parallel", "parallel", "arbitrary")
        state_scratch = [pltpu.VMEM((1, TQ), jnp.float32),    # running max
                         pltpu.VMEM((Vp, TQ), jnp.float32)]   # acc (+ l last row)

    weights = [wk, bk, wv, bv] + ([] if fold_w else [ww]) + [bw]
    in_specs = ([pl.BlockSpec((1, C, S), x_map)]
                + [pl.BlockSpec(wt.shape, w_map) for wt in weights])

    grid_spec = pltpu.PrefetchScalarGridSpec(
        num_scalar_prefetch=0,
        grid=grid,
        in_specs=in_specs,
        out_specs=pl.BlockSpec((1, Cout, TQ), out_map),
        scratch_shapes=[pltpu.VMEM((Kc, S), mm_dtype),   # kq (key == query)
                        pltpu.VMEM((Vp, S), mm_dtype)]   # value + ones row
                       + state_scratch,
    )

    out_ncs = pl.pallas_call(
        kernel,
        out_shape=jax.ShapeDtypeStruct((N, Cout, S), x_nchw.dtype),
        grid_spec=grid_spec,
        compiler_params=pltpu.CompilerParams(
            dimension_semantics=dim_sem,
            vmem_limit_bytes=vmem_limit),
    )(x_ncs, *weights)

    # (N, Cout, S) -> NCHW is again a free reshape (no transpose).
    return out_ncs.reshape(N, Cout, H, W)


# ---------------------------------------------------------------------------
# Pure-JAX reference mirroring the PyTorch forward (scale=1)
# ---------------------------------------------------------------------------
def reference_forward(x_nchw, raw, *, key_channels, eps=1e-5):
    N, C, H, W = x_nchw.shape
    S = H * W
    hp = lax.Precision.HIGHEST
    x = x_nchw.reshape(N, C, S).astype(jnp.float32)

    def conv1x1(inp, w, b):     # inp (N, Cin, S), w (Cout, Cin), b (Cout,)
        return jnp.einsum("oc,ncs->nos", w, inp, precision=hp) + b[None, :, None]

    kq = conv1x1(x, raw["wk"], raw["bk"])
    bn_scale = raw["gamma"] / jnp.sqrt(raw["running_var"] + eps)
    kq = (kq - raw["running_mean"][None, :, None]) * bn_scale[None, :, None] \
        + raw["beta"][None, :, None]
    kq = jnp.maximum(kq, 0.0)                                   # (N, Kc, S)
    v = conv1x1(x, raw["wv"], raw["bv"])                        # (N, Vc, S)

    sim = jnp.einsum("nks,nkt->nst", kq, kq, precision=hp) * (key_channels ** -0.5)
    sim = jax.nn.softmax(sim, axis=-1)                          # (N, Sq, Sk)
    ctx = jnp.einsum("nst,nvt->nvs", sim, v, precision=hp)      # (N, Vc, S)
    out = conv1x1(ctx, raw["ww"], raw["bw"])                    # (N, Cout, S)
    return out.reshape(N, -1, H, W)


def make_params(key, in_channels, key_channels, value_channels, out_channels):
    ks = jax.random.split(key, 10)
    wk = 0.2 * jax.random.normal(ks[0], (key_channels, in_channels), jnp.float32)
    bk = 0.1 * jax.random.normal(ks[1], (key_channels,), jnp.float32)
    gamma = 1.0 + 0.1 * jax.random.normal(ks[2], (key_channels,), jnp.float32)
    beta = 0.1 * jax.random.normal(ks[3], (key_channels,), jnp.float32)
    running_mean = 0.1 * jax.random.normal(ks[4], (key_channels,), jnp.float32)
    running_var = 1.0 + 0.2 * jax.random.uniform(ks[5], (key_channels,), jnp.float32)
    wv = 0.2 * jax.random.normal(ks[6], (value_channels, in_channels), jnp.float32)
    bv = 0.1 * jax.random.normal(ks[7], (value_channels,), jnp.float32)
    # NOTE: PyTorch inits W (output conv) to zeros; use nonzero deterministic
    # values instead so the full compute path is exercised.
    ww = 0.2 * jax.random.normal(ks[8], (out_channels, value_channels), jnp.float32)
    bw = 0.1 * jax.random.normal(ks[9], (out_channels,), jnp.float32)
    return dict(wk=wk, bk=bk, gamma=gamma, beta=beta,
                running_mean=running_mean, running_var=running_var,
                wv=wv, bv=bv, ww=ww, bw=bw)


if __name__ == "__main__":
    # Small shapes consistent with the module: N=2, C=4, H=W=16 (S=256).
    N, C, H, W = 2, 4, 16, 16
    key_channels, value_channels = 8, 8
    out_channels = C  # out_channels=None -> in_channels (W-fold path, Cout<=Vc)

    root = jax.random.PRNGKey(0)
    k_x, k_p, k_p2 = jax.random.split(root, 3)
    x = jax.random.normal(k_x, (N, C, H, W), jnp.float32)
    raw = make_params(k_p, C, key_channels, value_channels, out_channels)
    ref = reference_forward(x, raw, key_channels=key_channels)

    # 1) Default performance config: bf16 MXU operands (bf16 exp on v6e/v7x),
    #    single-pass softmax (TK = S fits VMEM), W folded into the values.
    out = jax.block_until_ready(
        self_attention_block_2d(x, raw, key_channels=key_channels))
    assert out.shape == (N, out_channels, H, W), out.shape
    err = float(jnp.max(jnp.abs(out - ref)))
    assert err < 5e-2, err

    # 2) Exact-semantics config: f32 operands, f32 exp, exact reciprocal.
    out_f32 = jax.block_until_ready(
        self_attention_block_2d(x, raw, key_channels=key_channels,
                                matmul_dtype=jnp.float32))
    err_f32 = float(jnp.max(jnp.abs(out_f32 - ref)))
    assert err_f32 < 2e-3, err_f32

    # 3) Flash (multi-kv-tile, online-softmax) path with real dynamic offsets.
    out_fl = jax.block_until_ready(
        self_attention_block_2d(x, raw, key_channels=key_channels,
                                q_tile=128, kv_tile=128))
    err_fl = float(jnp.max(jnp.abs(out_fl - ref)))
    assert err_fl < 5e-2, err_fl

    # 4) Non-folded output-conv path (Cout > Vc).
    raw2 = make_params(k_p2, C, key_channels, value_channels, 2 * value_channels)
    ref2 = reference_forward(x, raw2, key_channels=key_channels)
    out2 = jax.block_until_ready(
        self_attention_block_2d(x, raw2, key_channels=key_channels))
    assert out2.shape == (N, 2 * value_channels, H, W), out2.shape
    err2 = float(jnp.max(jnp.abs(out2 - ref2)))
    assert err2 < 5e-2, err2

    print("KERNEL_OK")
</pallas_src>

<mosaic_0001>
module attributes {stable_mosaic.version = 11 : i64} {
  func.func @kernel(%arg0: i32, %arg1: i32, %arg2: memref<1x4x256xbf16, #tpu.memory_space<vmem>>, %arg3: memref<8x4xf32, #tpu.memory_space<vmem>>, %arg4: memref<8x1xf32, #tpu.memory_space<vmem>>, %arg5: memref<4x4xf32, #tpu.memory_space<vmem>>, %arg6: memref<4x1xf32, #tpu.memory_space<vmem>>, %arg7: memref<4x1xf32, #tpu.memory_space<vmem>>, %arg8: memref<1x4x256xf32, #tpu.memory_space<vmem>>, %arg9: memref<8x256xbf16, #tpu.memory_space<vmem>>, %arg10: memref<5x256xbf16, #tpu.memory_space<vmem>>) attributes {dimension_semantics = [#tpu.dimension_semantics<parallel>, #tpu.dimension_semantics<parallel>], iteration_bounds = array<i64: 2, 1>, scalar_prefetch = 0 : i64, scratch_operands = 2 : i64, tpu.core_type = #tpu.core_type<tc>, window_params = [{transform_indices = @transform_0, window_bounds = array<i64: 1, 4, 256>}, {pipeline_mode = #tpu.pipeline_mode<synchronous>, transform_indices = @transform_1, window_bounds = array<i64: 8, 4>}, {pipeline_mode = #tpu.pipeline_mode<synchronous>, transform_indices = @transform_2, window_bounds = array<i64: 8, 1>}, {pipeline_mode = #tpu.pipeline_mode<synchronous>, transform_indices = @transform_3, window_bounds = array<i64: 4, 4>}, {pipeline_mode = #tpu.pipeline_mode<synchronous>, transform_indices = @transform_4, window_bounds = array<i64: 4, 1>}, {pipeline_mode = #tpu.pipeline_mode<synchronous>, transform_indices = @transform_5, window_bounds = array<i64: 4, 1>}, {transform_indices = @transform_6, window_bounds = array<i64: 1, 4, 256>}]} {
    %c256_i32 = arith.constant 256 : i32
    %0 = arith.muli %arg1, %c256_i32 : i32
    %1 = tpu.assume_multiple %0, 256 : i32
    %c0 = arith.constant 0 : index
    %c0_0 = arith.constant 0 : index
    %c0_1 = arith.constant 0 : index
    %2 = vector.load %arg2[%c0, %c0_0, %c0_1] : memref<1x4x256xbf16, #tpu.memory_space<vmem>>, vector<1x4x256xbf16>
    %3 = vector.shape_cast %2 : vector<1x4x256xbf16> to vector<4x256xbf16>
    %c0_2 = arith.constant 0 : index
    %c0_3 = arith.constant 0 : index
    %4 = vector.load %arg3[%c0_2, %c0_3] : memref<8x4xf32, #tpu.memory_space<vmem>>, vector<8x4xf32>
    %cst = arith.constant dense<0.000000e+00> : vector<8x256xf32>
    %5 = tpu.matmul %4, %3, %cst {dimension_numbers = #tpu.dot_dimension_numbers<[1], [0], [0], [1], [0, 0, 1, 1], [], []>} : vector<8x4xf32>, vector<4x256xbf16>, vector<8x256xf32> -> vector<8x256xf32>
    %c0_4 = arith.constant 0 : index
    %c0_5 = arith.constant 0 : index
    %6 = vector.load %arg4[%c0_4, %c0_5] : memref<8x1xf32, #tpu.memory_space<vmem>>, vector<8x1xf32>
    %7 = vector.broadcast %6 : vector<8x1xf32> to vector<8x256xf32>
    %8 = arith.addf %5, %7 : vector<8x256xf32>
    %cst_6 = arith.constant 0.000000e+00 : f32
    %9 = vector.broadcast %cst_6 : f32 to vector<8x256xf32>
    %10 = arith.maximumf %8, %9 : vector<8x256xf32>
    %11 = arith.truncf %10 : vector<8x256xf32> to vector<8x256xbf16>
    %c0_7 = arith.constant 0 : index
    %c0_8 = arith.constant 0 : index
    %12 = vector.load %arg9[%c0_7, %c0_8] : memref<8x256xbf16, #tpu.memory_space<vmem>>, vector<8x256xbf16>
    tpu.vector_store %arg9[%c0_7, %c0_8], %11 {strides = array<i32>} : memref<8x256xbf16, #tpu.memory_space<vmem>>, vector<8x256xbf16>,
    %c0_9 = arith.constant 0 : index
    %c0_10 = arith.constant 0 : index
    %13 = vector.load %arg5[%c0_9, %c0_10] : memref<4x4xf32, #tpu.memory_space<vmem>>, vector<4x4xf32>
    %cst_11 = arith.constant dense<0.000000e+00> : vector<4x256xf32>
    %14 = tpu.matmul %13, %3, %cst_11 {dimension_numbers = #tpu.dot_dimension_numbers<[1], [0], [0], [1], [0, 0, 1, 1], [], []>} : vector<4x4xf32>, vector<4x256xbf16>, vector<4x256xf32> -> vector<4x256xf32>
    %c0_12 = arith.constant 0 : index
    %c0_13 = arith.constant 0 : index
    %15 = vector.load %arg6[%c0_12, %c0_13] : memref<4x1xf32, #tpu.memory_space<vmem>>, vector<4x1xf32>
    %16 = vector.broadcast %15 : vector<4x1xf32> to vector<4x256xf32>
    %17 = arith.addf %14, %16 : vector<4x256xf32>
    %18 = arith.truncf %17 : vector<4x256xf32> to vector<4x256xbf16>
    %c0_14 = arith.constant 0 : index
    %c0_15 = arith.constant 0 : index
    %19 = vector.load %arg10[%c0_14, %c0_15] : memref<5x256xbf16, #tpu.memory_space<vmem>>, vector<4x256xbf16>
    tpu.vector_store %arg10[%c0_14, %c0_15], %18 {strides = array<i32>} : memref<5x256xbf16, #tpu.memory_space<vmem>>, vector<4x256xbf16>,
    %cst_16 = arith.constant 1.000000e+00 : bf16
    %20 = vector.broadcast %cst_16 : bf16 to vector<1x256xbf16>
    %c4 = arith.constant 4 : index
    %c0_17 = arith.constant 0 : index
    %21 = vector.load %arg10[%c4, %c0_17] : memref<5x256xbf16, #tpu.memory_space<vmem>>, vector<1x256xbf16>
    tpu.vector_store %arg10[%c4, %c0_17], %20 {strides = array<i32>} : memref<5x256xbf16, #tpu.memory_space<vmem>>, vector<1x256xbf16>,
    %c0_18 = arith.constant 0 : index
    %22 = arith.index_cast %1 : i32 to index
    %23 = vector.load %arg9[%c0_18, %22] : memref<8x256xbf16, #tpu.memory_space<vmem>>, vector<8x256xbf16>
    %c0_19 = arith.constant 0 : index
    %c0_20 = arith.constant 0 : index
    %24 = vector.load %arg9[%c0_19, %c0_20] : memref<8x256xbf16, #tpu.memory_space<vmem>>, vector<8x256xbf16>
    %cst_21 = arith.constant dense<0.000000e+00> : vector<256x256xf32>
    %25 = tpu.matmul %24, %23, %cst_21 {dimension_numbers = #tpu.dot_dimension_numbers<[0], [0], [1], [1], [0, 1, 1, 1], [], []>} : vector<8x256xbf16>, vector<8x256xbf16>, vector<256x256xf32> -> vector<256x256xf32>
    %cst_22 = arith.constant dense<0xFF800000> : vector<256xf32>
    %26 = vector.multi_reduction <maximumf>, %25, %cst_22 [0] : vector<256x256xf32> to vector<256xf32>
    %27 = vector.shape_cast %26 : vector<256xf32> to vector<1x256xf32>
    %28 = vector.broadcast %27 : vector<1x256xf32> to vector<256x256xf32>
    %29 = arith.subf %25, %28 : vector<256x256xf32>
    %30 = arith.truncf %29 : vector<256x256xf32> to vector<256x256xbf16>
    %31 = math.exp %30 : vector<256x256xbf16>
    %c0_23 = arith.constant 0 : index
    %c0_24 = arith.constant 0 : index
    %32 = vector.load %arg10[%c0_23, %c0_24] : memref<5x256xbf16, #tpu.memory_space<vmem>>, vector<5x256xbf16>
    %cst_25 = arith.constant dense<0.000000e+00> : vector<5x256xf32>
    %33 = tpu.matmul %32, %31, %cst_25 {dimension_numbers = #tpu.dot_dimension_numbers<[1], [0], [0], [1], [0, 0, 1, 1], [], []>} : vector<5x256xbf16>, vector<256x256xbf16>, vector<5x256xf32> -> vector<5x256xf32>
    %34 = vector.extract_strided_slice %33 {offsets = [4, 0], sizes = [1, 256], strides = [1, 1]} : vector<5x256xf32> to vector<1x256xf32>
    %35 = tpu.reciprocal %34 {approx = true} : vector<1x256xf32> -> vector<1x256xf32>
    %36 = vector.extract_strided_slice %33 {offsets = [0, 0], sizes = [4, 256], strides = [1, 1]} : vector<5x256xf32> to vector<4x256xf32>
    %37 = vector.broadcast %35 : vector<1x256xf32> to vector<4x256xf32>
    %38 = arith.mulf %36, %37 : vector<4x256xf32>
    %c0_26 = arith.constant 0 : index
    %c0_27 = arith.constant 0 : index
    %39 = vector.load %arg7[%c0_26, %c0_27] : memref<4x1xf32, #tpu.memory_space<vmem>>, vector<4x1xf32>
    %40 = vector.broadcast %39 : vector<4x1xf32> to vector<4x256xf32>
    %41 = arith.addf %38, %40 : vector<4x256xf32>
    %c0_28 = arith.constant 0 : index
    %c0_29 = arith.constant 0 : index
    %c0_30 = arith.constant 0 : index
    %42 = vector.load %arg8[%c0_28, %c0_29, %c0_30] : memref<1x4x256xf32, #tpu.memory_space<vmem>>, vector<1x4x256xf32>
    %43 = vector.shape_cast %42 : vector<1x4x256xf32> to vector<4x256xf32>
    %44 = vector.shape_cast %41 : vector<4x256xf32> to vector<1x4x256xf32>
    tpu.vector_store %arg8[%c0_28, %c0_29, %c0_30], %44 {strides = array<i32>} : memref<1x4x256xf32, #tpu.memory_space<vmem>>, vector<1x4x256xf32>,
    return
  }
  func.func @transform_0(%arg0: i32, %arg1: i32) -> (i32, i32, i32) {
    %c0_i32 = arith.constant 0 : i32
    %c0_i32_0 = arith.constant 0 : i32
    %c0_i32_1 = arith.constant 0 : i32
    return %arg0, %c0_i32, %c0_i32_0 : i32, i32, i32
  }
  func.func @transform_1(%arg0: i32, %arg1: i32) -> (i32, i32) {
    %c0_i32 = arith.constant 0 : i32
    %c0_i32_0 = arith.constant 0 : i32
    %c0_i32_1 = arith.constant 0 : i32
    return %c0_i32, %c0_i32_0 : i32, i32
  }
  func.func @transform_2(%arg0: i32, %arg1: i32) -> (i32, i32) {
    %c0_i32 = arith.constant 0 : i32
    %c0_i32_0 = arith.constant 0 : i32
    %c0_i32_1 = arith.constant 0 : i32
    return %c0_i32, %c0_i32_0 : i32, i32
  }
  func.func @transform_3(%arg0: i32, %arg1: i32) -> (i32, i32) {
    %c0_i32 = arith.constant 0 : i32
    %c0_i32_0 = arith.constant 0 : i32
    %c0_i32_1 = arith.constant 0 : i32
    return %c0_i32, %c0_i32_0 : i32, i32
  }
  func.func @transform_4(%arg0: i32, %arg1: i32) -> (i32, i32) {
    %c0_i32 = arith.constant 0 : i32
    %c0_i32_0 = arith.constant 0 : i32
    %c0_i32_1 = arith.constant 0 : i32
    return %c0_i32, %c0_i32_0 : i32, i32
  }
  func.func @transform_5(%arg0: i32, %arg1: i32) -> (i32, i32) {
    %c0_i32 = arith.constant 0 : i32
    %c0_i32_0 = arith.constant 0 : i32
    %c0_i32_1 = arith.constant 0 : i32
    return %c0_i32, %c0_i32_0 : i32, i32
  }
  func.func @transform_6(%arg0: i32, %arg1: i32) -> (i32, i32, i32) {
    %c0_i32 = arith.constant 0 : i32
    %c0_i32_0 = arith.constant 0 : i32
    return %arg0, %c0_i32, %arg1 : i32, i32, i32
  }
}

</mosaic_0001>

<bundles_post_ra>
// kernel: tpu_custom_call.1
= control target key start
LH: loop header
LB: loop body
LE: loop exit
PB: predicated region body
PF: predicated region fallthrough
CT: control target
= control target key end

     0   :  { %11 = vsyncpa [#allocation5], 0  ;;  %s2130_s0 = inlined_call_operand.vmem [shape: bf16[2,4,256], index: 0, kind: input, shape index: {}]   ;;  %s2131_s1 = inlined_call_operand.vmem [shape: f32[8,4], index: 1, kind: input, shape index: {}]   ;;  %s2132_s2 = inlined_call_operand.vmem [shape: f32[8,1], index: 2, kind: input, shape index: {}]   ;;  %s2133_s3 = inlined_call_operand.vmem [shape: f32[4,4], index: 3, kind: input, shape index: {}]   ;;  %s2134_s4 = inlined_call_operand.vmem [shape: f32[4,1], index: 4, kind: input, shape index: {}]   ;;  %s2135_s5 = inlined_call_operand.vmem [shape: f32[4,1], index: 5, kind: input, shape index: {}]   ;;  %s2136_s6 = inlined_call_operand.hbm [shape: f32[2,4,256], index: 6, kind: output, shape index: {}]  }
   0x1   :  { %13 = vsyncpa [#allocation5 + $0x1], 0  ;;  %s1570_s21 = smov 0   ;;  %s1572_s22 = smov 0  }
   0x2   :  { %s1574_s23 = smov 0   ;;  %s1576_s24 = smov 0  }
   0x3   :  { %s1578_s25 = smov 0   ;;  %s1580_s26 = smov 0  }
   0x4 LB: > { %s1211_s27 = sadd.s32 4294967295, %s1532_s26   ;;  %s1212_s28 = sadd.s32 4294967294, %s1532_s26   ;;  %s1532_s26 = sphi %s1580_s26, %s19_s26   ;;  %s1528_s25 = sphi %s1578_s25, %s2219_s25   ;;  %s1524_s24 = sphi %s1576_s24, %s2218_s24   ;;  %s1520_s23 = sphi %s1574_s23, %s2217_s23   ;;  %s1516_s22 = sphi %s1572_s22, %s2216_s22   ;;  %s1512_s21 = sphi %s1570_s21, %s2215_s21  }
   0x5   : > { %s31_s29 = sadd.s32 1, %s1528_s25  ;;  %s171_s30 = sadd.s32 1, %s1520_s23 }
   0x6   : > { %p33_p0 = scmp.ge.s32.totalorder %s31_s29, 2  ;;  %p181_p1 = scmp.ne.s32.totalorder %s1520_s23, %s1516_s22 }
   0x7   : > { %p182_p2 = scmp.eq.s32.totalorder %s1211_s27, 1  ;;  %p187_p3 = scmp.ne.s32.totalorder %s1516_s22, %s1512_s21 }
   0x8   : > { %s2221_s29 = smov (%p33_p0, %s31_s29), 0  ;;  %p188_p5 = scmp.eq.s32.totalorder %s1212_s28, 1 }
   0x9   : > { %p1610_p4 = por %p182_p2, %p181_p1  ;;  %s166_s8 = ssub.s32 %s1528_s25, %s2221_s29 }
   0xa   : > { %p1215_p6 = scmp.ge.s32.totalorder %s1532_s26, 1  ;;  %p169_p7 = scmp.eq.s32.totalorder %s166_s8, 0 }
   0xb   : > { %p1617_p8 = por %p188_p5, %p187_p3  ;;  %p229_p9 = scmp.lt.s32.totalorder %s1532_s26, 3 }
   0xc   : > { %s1623_s10 = scalar_select %p169_p7, %s1520_s23, %s171_s30  }
   0xd   : > { %p230_p10 = pnand %p1215_p6, %p229_p9 }
   0xf   : > { %233 = sbr.rel (%p230_p10) target bundleno = 923 (0x39b), region = 44 }
  0x14   : > { %p259_p11 = scmp.lt.s32.totalorder %s1524_s24, 1  ;;  %v270_v0 = vld [vmem:[%s2132_s2] sm:$0xff]  ;;  %v1534_v1 = vmov 0   ;;  %vm284_vm0 = vcmask 1041408   ;;  %vm280_vm1 = vcmask 31744   ;;  %vm461_vm2 = vcmask 1043456  }
  0x15   : > { %1320 = vset.pattern.permute.xlu0 %v1534_v1  ;;  %1321 = vset.pattern.permute.xlu1 %v1534_v1  ;;  %v269_v7 = vld [vmem:[%s2131_s1] sm:$0xff]  ;;  %vm412_vm3 = vcmask 64512   ;;  %vm360_vm4 = vcmask 1042434   ;;  %vm361_vm5 = vsmask.f32 2304  ;;  %vm363_vm6 = vcmask 1046534  }
  0x16   : > { %s260_s13 = scalar_select %p259_p11, %s1524_s24, 1  ;;  %273 = vperm.xlu0 %1320, %v270_v0   ;;  %v317_v27 = vld [vmem:[%s2133_s3] sm:$0xf]  ;;  %vm364_vm7 = vsmask.f32 6400  ;;  %vm362_vm8 = vmand %vm360_vm4, %vm361_vm5 }
  0x17   : > { %v318_v33 = vld [vmem:[%s2134_s4] sm:$0xf]  ;;  %vm365_vm9 = vmand %vm363_vm6, %vm364_vm7  ;;  %s256_s12 = sand.u32 1, %s1516_s22   ;;  %s1474_s11 = scalar_lea.hbm %s2136_s6, 16 }
  0x18   : > { %s1260_s14 = sshll.u32 %s260_s13, 2  ;;  %321 = vperm.xlu1 %1321, %v318_v33   ;;  %vm366_vm10 = vmor %vm365_vm9, %vm362_vm8  ;;  %s1216_s13 = sshll.u32 %s256_s12, 3 }
  0x19   : > { %s263_s17 = scalar_lea.vmem %s2130_s0, %s1260_s14  ;;  %s1261_s14 = sshll.u32 %s1524_s24, 3 }
  0x1a   : > { %v268_v2 = vld [vmem:[%s263_s17] sm:$0xf]  ;;  %s1134_s17 = scalar_lea.hbm %s2136_s6, %s1261_s14  ;;  %s258_s18 = scalar_lea.vmem [#allocation4], %s1216_s13 }
  0x1b   : > { %277 = vst [vmem:[#allocation1] ss:$4 sm:$0xff] %v268_v2  ;;  %s1136_s19 = sshll.u32 %s258_s18, 4  ;;  %s1138_s20 = sshll.u32 %s1134_s17, 4  ;;  %s1137_s19 = int_to_ptr.vmem [resolvable:$true] %s1136_s19  ;;  %s1139_s20 = int_to_ptr.hbm [resolvable:$true] %s1138_s20 }
  0x1c   : > { %s1121_s24 = scalar_lea.sflag [#allocation5], %s256_s12  ;;  %s1468_s27 = sshra.s32 %s1139_s20, 4  ;;  %s1469_s27 = int_to_ptr.hbm [resolvable:$true] %s1468_s27 }
  0x1d   : > { %s1470_s28 = scalar_lea.hbm %s1469_s27, 8  ;;  %p1475_p1 = scmp.lt.s32.totalorder %s1469_s27, %s2136_s6 }
  0x1e   : > { %p1471_p12 = scmp.ne.s32.totalorder %s1469_s27, %s1470_s28  ;;  %p1476_p2 = scmp.lt.s32.totalorder %s1474_s11, %s1470_s28 }
  0x20   : > { %p1472_p13 = pnand %p1471_p12, %p1610_p4  ;;  %p1477_p3 = por %p1476_p2, %p1475_p1 }
  0x22   : > { %v278_v3 = vld.sshfl [vmem:[#allocation1] sm:$0xff pattern:$0x73625140]  ;;  %v279_v4 = vld.sshfl [vmem:[#allocation1 + $0x8] sm:$0xff pattern:$0x73625140]  ;;  %p1473_p0 = pneg %p1472_p13 }
  0x23   : > { %v285_v5 = vsel %vm284_vm0, %v278_v3, 0  ;;  %v287_v6 = vsel %vm284_vm0, %v279_v4, 0  ;;  %324 = vst [vmem:[#allocation1] ss:$4 sm:$0xff] %v268_v2 }
  0x24   : > { %296 = vmatpush.bf16.msra.mxu2 %v285_v5  ;;  %308 = vmatpush.bf16.msra.mxu3 %v287_v6  ;;  %p1478_p5 = pnand %p1477_p3, %p1473_p0 }
  0x27   : > { %1219 = vmatmul.msk.f32.vlgmr.msra.gmra.mxu2 %vm280_vm1, %v269_v7  ;;  %1220 = vmatmul.msk.f32.vlgmr.msra.gmra.mxu3 %vm280_vm1, %v269_v7 }
  0x2a   : > { %v325_v8 = vld.sshfl [vmem:[#allocation1] sm:$0xff pattern:$0x73625140]  ;;  %v326_v9 = vld.sshfl [vmem:[#allocation1 + $0x8] sm:$0xff pattern:$0x73625140] }
  0x2b   : > { %v330_v10 = vsel %vm284_vm0, %v325_v8, 0  ;;  %v332_v11 = vsel %vm284_vm0, %v326_v9, 0 }
  0x2c   : > { %341 = vmatpush.bf16.msrb.mxu2 %v330_v10  ;;  %353 = vmatpush.bf16.msrb.mxu3 %v332_v11 }
  0x2f   : > { %1221 = vmatmul.msk.f32.vlgmr.msrb.gmra.mxu2 %vm280_vm1, %v317_v27  ;;  %1222 = vmatmul.msk.f32.vlgmr.msrb.gmra.mxu3 %vm280_vm1, %v317_v27 }
  0x88   : > { %v274_v12 = vpop.permute.xlu0 %273 }
  0x8a   : > { %v322_v56 = vpop.permute.xlu1 %321 }
  0xaa   : > { %v298_v13 = vpop.f32.mrf.mxu2  ;;  %v310_v14 = vpop.f32.mrf.mxu3 }
  0xab   : > { %v299_v15 = vadd.f32 %v298_v13, %v274_v12  ;;  %v311_v16 = vadd.f32 %v310_v14, %v274_v12 }
  0xad   : > { %v313_v17 = vmax.f32 %v299_v15, 0.0  ;;  %v314_v18 = vmax.f32 %v311_v16, 0.0 }
  0xaf   : > { %v315_v19 = vpack.c.bf16 %v314_v18, %v313_v17 }
  0xb1   : > { %v377_v20 = vunpack.c.l.b16 %v315_v19  ;;  %v378_v21 = vunpack.c.h.b16 %v315_v19 }
  0xb2   : > { %v343_v52 = vpop.f32.mrf.mxu2  ;;  %v355_v55 = vpop.f32.mrf.mxu3 }
  0xb3   : > { %v379_v22 = vpack.c.b16 %v377_v20, %v377_v20  ;;  %v380_v23 = vpack.c.b16 %v378_v21, %v378_v21  ;;  %v344_v57 = vadd.f32 %v343_v52, %v322_v56  ;;  %v356_v58 = vadd.f32 %v355_v55, %v322_v56 }
  0xb5   : > { %383 = vxpose.binary.xlu0.c.b16.start.end [1/2] (short) %v380_v23, %v379_v22, 128  ;;  %v463_v24 = vsel %vm461_vm2, %v379_v22, 0  ;;  %v466_v25 = vsel %vm461_vm2, %v380_v23, 0  ;;  %v358_v59 = vpack.c.bf16 %v356_v58, %v344_v57  ;;  %v1106_v22 = vld [vmem:[%s2135_s5] sm:$0xf] }
  0xb6   : > { %475 = vmatpush.bf16.msra.mxu0 %v463_v24  ;;  %1262 = vmatpush.bf16.msra.mxu2 %v463_v24 }
  0xb7   : > { %564 = vmatpush.bf16.msra.mxu1 %v466_v25  ;;  %1263 = vmatpush.bf16.msra.mxu3 %v466_v25  ;;  %359 = vst [vmem:[#allocation3] sm:$0x33] %v358_v59 }
  0xb8   : > { %1109 = vperm.xlu1 %1321, %v1106_v22  }
 0x161   : > { %v391_v26 = vpop.trf.xlu0 }
 0x162   : > { %1223 = vmatmul.msk.bf16.vlgmr.msra.gmra.mxu0 %vm412_vm3, %v391_v26  ;;  %1239 = vmatmul.msk.bf16.vlgmr.msra.gmra.mxu1 %vm412_vm3, %v391_v26 }
 0x169   : > { %v392_v28 = vpop.trf.xlu0 }
 0x171   : > { %v393_v29 = vpop.trf.xlu0 }
 0x172   : > { %1224 = vmatmul.msk.bf16.gmra.mxu0 %vm412_vm3, %v393_v29  ;;  %1240 = vmatmul.msk.bf16.gmra.mxu1 %vm412_vm3, %v393_v29 }
 0x179   : > { %v394_v30 = vpop.trf.xlu0 }
 0x181   : > { %v395_v31 = vpop.trf.xlu0 }
 0x182   : > { %1225 = vmatmul.msk.bf16.gmra.mxu0 %vm412_vm3, %v395_v31  ;;  %1241 = vmatmul.msk.bf16.gmra.mxu1 %vm412_vm3, %v395_v31 }
 0x189   : > { %v396_v32 = vpop.trf.xlu0 }
 0x18a   : > { %1233 = vmatmul.msk.bf16.vlgmr.msra.gmra.mxu2 %vm412_vm3, %v396_v32  ;;  %1249 = vmatmul.msk.bf16.vlgmr.msra.gmra.mxu3 %vm412_vm3, %v396_v32 }
 0x191   : > { %v397_v34 = vpop.trf.xlu0 }
 0x192   : > { %1226 = vmatmul.msk.bf16.gmra.mxu0 %vm412_vm3, %v397_v34  ;;  %1242 = vmatmul.msk.bf16.gmra.mxu1 %vm412_vm3, %v397_v34 }
 0x199   : > { %v398_v35 = vpop.trf.xlu0 }
 0x19a   : > { %1234 = vmatmul.msk.bf16.gmra.mxu2 %vm412_vm3, %v398_v35  ;;  %1250 = vmatmul.msk.bf16.gmra.mxu3 %vm412_vm3, %v398_v35 }
 0x1a1   : > { %v399_v36 = vpop.trf.xlu0 }
 0x1a2   : > { %1227 = vmatmul.msk.bf16.gmra.mxu0 %vm412_vm3, %v399_v36  ;;  %1243 = vmatmul.msk.bf16.gmra.mxu1 %vm412_vm3, %v399_v36 }
 0x1a9   : > { %v400_v37 = vpop.trf.xlu0 }
 0x1aa   : > { %1235 = vmatmul.msk.bf16.gmra.mxu2 %vm412_vm3, %v400_v37  ;;  %1251 = vmatmul.msk.bf16.gmra.mxu3 %vm412_vm3, %v400_v37 }
 0x1b1   : > { %v401_v38 = vpop.trf.xlu0 }
 0x1b2   : > { %1228 = vmatmul.msk.bf16.gmra.mxu0 %vm412_vm3, %v401_v38  ;;  %1244 = vmatmul.msk.bf16.gmra.mxu1 %vm412_vm3, %v401_v38 }
 0x1b9   : > { %v402_v39 = vpop.trf.xlu0 }
 0x1ba   : > { %1236 = vmatmul.msk.bf16.gmra.mxu2 %vm412_vm3, %v402_v39  ;;  %1252 = vmatmul.msk.bf16.gmra.mxu3 %vm412_vm3, %v402_v39 }
 0x1c1   : > { %v403_v40 = vpop.trf.xlu0 }
 0x1c2   : > { %1229 = vmatmul.msk.bf16.gmra.mxu0 %vm412_vm3, %v403_v40  ;;  %1245 = vmatmul.msk.bf16.gmra.mxu1 %vm412_vm3, %v403_v40 }
 0x1c9   : > { %v404_v41 = vpop.trf.xlu0 }
 0x1ca   : > { %1237 = vmatmul.msk.bf16.gmra.mxu2 %vm412_vm3, %v404_v41  ;;  %1253 = vmatmul.msk.bf16.gmra.mxu3 %vm412_vm3, %v404_v41 }
 0x1d1   : > { %v405_v42 = vpop.trf.xlu0 }
 0x1d2   : > { %1230 = vmatmul.msk.bf16.gmra.mxu0 %vm412_vm3, %v405_v42  ;;  %1246 = vmatmul.msk.bf16.gmra.mxu1 %vm412_vm3, %v405_v42  ;;  %v367_v42 = vld [vmem:[#allocation3] sm:$0x44] }
 0x1d3   : > { %v368_v57 = vsel %vm366_vm10, 1065369472, %v367_v42 }
 0x1d4   : > { %369 = vst [vmem:[#allocation3] sm:$0x44] %v368_v57 }
 0x1d9   : > { %v406_v43 = vpop.trf.xlu0 }
 0x1da   : > { %1238 = vmatmul.msk.bf16.gmra.mxu2 %vm412_vm3, %v406_v43  ;;  %1254 = vmatmul.msk.bf16.gmra.mxu3 %vm412_vm3, %v406_v43 }
 0x1df   : > { %v1676_v44 = vpop.f32.mrf.mxu0  ;;  %v1678_v45 = vpop.f32.mrf.mxu1 }
 0x1e2   : > { %1231 = vmatmul.msk.bf16.gmra.mxu0 %vm412_vm3, %v392_v28  ;;  %1247 = vmatmul.msk.bf16.gmra.mxu1 %vm412_vm3, %v392_v28 }
 0x1e7   : > { %v1682_v46 = vpop.f32.mrf.mxu0  ;;  %v1684_v47 = vpop.f32.mrf.mxu1 }
 0x1ef   : > { %v1686_v48 = vpop.f32.mrf.mxu1  ;;  %v1688_v49 = vpop.f32.mrf.mxu0 }
 0x1f0   : > { %v646_v36 = vmax.f32 %v1676_v44, %v1688_v49  ;;  %v683_v38 = vmax.f32 %v1678_v45, %v1686_v48 }
 0x1f2   : > { %1232 = vmatmul.msk.bf16.gmra.mxu0 %vm412_vm3, %v394_v30  ;;  %1248 = vmatmul.msk.bf16.gmra.mxu1 %vm412_vm3, %v394_v30 }
 0x1f7   : > { %v1692_v50 = vpop.f32.mrf.mxu0  ;;  %v1694_v51 = vpop.f32.mrf.mxu1 }
 0x1f8   : > { %2165 = vst [vmem:[#allocation7_spill] sm:$0xff] %v1694_v51  ;;  %v647_v58 = vmax.f32 %v1682_v46, %v1692_v50  ;;  %v684_v59 = vmax.f32 %v1684_v47, %v1694_v51 }
 0x1ff   : > { %v1696_v53 = vpop.f32.mrf.mxu0  ;;  %v1698_v54 = vpop.f32.mrf.mxu1 }
 0x200   : > { %2166 = vst [vmem:[#allocation8_spill] sm:$0xff] %v1698_v54  ;;  %v648_v39 = vmax.f32 %v646_v36, %v1696_v53  ;;  %v685_v40 = vmax.f32 %v683_v38, %v1698_v54 }
 0x207   : > { %v1700_v60 = vpop.f32.mrf.mxu0  ;;  %v1702_v61 = vpop.f32.mrf.mxu1 }
 0x208   : > { %2167 = vst [vmem:[#allocation9_spill] sm:$0xff] %v1702_v61 }
 0x20d   : > { %v1712_v2 = vpop.f32.mrf.mxu2  ;;  %v1714_v3 = vpop.f32.mrf.mxu3 }
 0x20e   : > { %2170 = vst [vmem:[#allocation12_spill] sm:$0xff] %v1714_v3 }
 0x20f   : > { %v1704_v62 = vpop.f32.mrf.mxu0  ;;  %v1706_v63 = vpop.f32.mrf.mxu1 }
 0x210   : > { %2168 = vst [vmem:[#allocation10_spill] sm:$0xff] %v1706_v63  ;;  %v650_v41 = vmax.f32 %v648_v39, %v1704_v62  ;;  %v687_v43 = vmax.f32 %v685_v40, %v1706_v63  ;;  %v649_v39 = vmax.f32 %v647_v58, %v1700_v60  ;;  %v686_v40 = vmax.f32 %v684_v59, %v1702_v61 }
 0x215   : > { %v1720_v6 = vpop.f32.mrf.mxu2  ;;  %v1722_v7 = vpop.f32.mrf.mxu3 }
 0x216   : > { %2172 = vst [vmem:[#allocation14_spill] sm:$0xff] %v1722_v7 }
 0x217   : > { %v1708_v0 = vpop.f32.mrf.mxu0  ;;  %v1710_v1 = vpop.f32.mrf.mxu1 }
 0x218   : > { %2169 = vst [vmem:[#allocation11_spill] sm:$0xff] %v1710_v1  ;;  %v651_v54 = vmax.f32 %v649_v39, %v1708_v0  ;;  %v688_v51 = vmax.f32 %v686_v40, %v1710_v1 }
 0x21d   : > { %v1728_v10 = vpop.f32.mrf.mxu2  ;;  %v1730_v11 = vpop.f32.mrf.mxu3 }
 0x21e   : > { %2174 = vst [vmem:[#allocation16_spill] sm:$0xff] %v1730_v11 }
 0x21f   : > { %v1716_v4 = vpop.f32.mrf.mxu0  ;;  %v1718_v5 = vpop.f32.mrf.mxu1 }
 0x220   : > { %2171 = vst [vmem:[#allocation13_spill] sm:$0xff] %v1718_v5  ;;  %v652_v52 = vmax.f32 %v650_v41, %v1716_v4  ;;  %v689_v22 = vmax.f32 %v687_v43, %v1718_v5 }
 0x225   : > { %v1736_v14 = vpop.f32.mrf.mxu2  ;;  %v1742_v17 = vpop.f32.mrf.mxu3 }
 0x226   : > { %2177 = vst [vmem:[#allocation19_spill] sm:$0xff] %v1742_v17 }
 0x227   : > { %v1724_v8 = vpop.f32.mrf.mxu0  ;;  %v1726_v9 = vpop.f32.mrf.mxu1 }
 0x228   : > { %2173 = vst [vmem:[#allocation15_spill] sm:$0xff] %v1726_v9  ;;  %v653_v57 = vmax.f32 %v651_v54, %v1724_v8  ;;  %v690_v58 = vmax.f32 %v688_v51, %v1726_v9 }
 0x22d   : > { %v1748_v20 = vpop.f32.mrf.mxu2  ;;  %v1750_v21 = vpop.f32.mrf.mxu3 }
 0x22f   : > { %v1732_v12 = vpop.f32.mrf.mxu0  ;;  %v1734_v13 = vpop.f32.mrf.mxu1 }
 0x230   : > { %2175 = vst [vmem:[#allocation17_spill] sm:$0xff] %v1734_v13  ;;  %v654_v36 = vmax.f32 %v652_v52, %v1732_v12  ;;  %v691_v41 = vmax.f32 %v689_v22, %v1734_v13 }
 0x235   : > { %v1759_v25 = vpop.f32.mrf.mxu2  ;;  %v1761_v26 = vpop.f32.mrf.mxu3 }
 0x236   : > { %2178 = vst [vmem:[#allocation20_spill] sm:$0xff] %v1761_v26 }
 0x237   : > { %v1738_v15 = vpop.f32.mrf.mxu0  ;;  %v1740_v16 = vpop.f32.mrf.mxu1 }
 0x238   : > { %2176 = vst [vmem:[#allocation18_spill] sm:$0xff] %v1740_v16  ;;  %v655_v39 = vmax.f32 %v653_v57, %v1738_v15  ;;  %v692_v40 = vmax.f32 %v690_v58, %v1740_v16 }
 0x23d   : > { %v1767_v29 = vpop.f32.mrf.mxu2  ;;  %v1769_v30 = vpop.f32.mrf.mxu3 }
 0x23e   : > { %2179 = vst [vmem:[#allocation21_spill] sm:$0xff] %v1769_v30 }
 0x23f   : > { %v1744_v18 = vpop.f32.mrf.mxu0  ;;  %v1746_v19 = vpop.f32.mrf.mxu1 }
 0x240   : > { %v656_v42 = vmax.f32 %v654_v36, %v1744_v18  ;;  %v693_v43 = vmax.f32 %v691_v41, %v1746_v19 }
 0x245   : > { %v1775_v33 = vpop.f32.mrf.mxu2  ;;  %v1783_v37 = vpop.f32.mrf.mxu3 }
 0x246   : > { %2182 = vst [vmem:[#allocation24_spill] sm:$0xff] %v1783_v37 }
 0x247   : > { %v1755_v23 = vpop.f32.mrf.mxu0  ;;  %v1757_v24 = vpop.f32.mrf.mxu1 }
 0x248   : > { %v657_v54 = vmax.f32 %v655_v39, %v1755_v23  ;;  %v694_v51 = vmax.f32 %v692_v40, %v1757_v24 }
 0x24d   : > { %v1802_v38 = vpop.f32.mrf.mxu2  ;;  %v1808_v63 = vpop.f32.mrf.mxu3 }
 0x24f   : > { %v1763_v27 = vpop.f32.mrf.mxu0  ;;  %v1765_v28 = vpop.f32.mrf.mxu1 }
 0x250   : > { %v658_v52 = vmax.f32 %v656_v42, %v1763_v27  ;;  %v695_v59 = vmax.f32 %v693_v43, %v1765_v28 }
 0x255   : > { %v1828_v9 = vpop.f32.mrf.mxu2  ;;  %v1834_v1 = vpop.f32.mrf.mxu3 }
 0x256   : > { %2184 = vst [vmem:[#allocation26_spill] sm:$0xff] %v1834_v1 }
 0x257   : > { %v1771_v31 = vpop.f32.mrf.mxu0  ;;  %v1773_v32 = vpop.f32.mrf.mxu1 }
 0x258   : > { %2180 = vst [vmem:[#allocation22_spill] sm:$0xff] %v1773_v32  ;;  %v659_v5 = vmax.f32 %v657_v54, %v1771_v31  ;;  %v696_v57 = vmax.f32 %v694_v51, %v1773_v32 }
 0x25d   : > { %v552_v61 = vpop.f32.mrf.mxu2 }
 0x25f   : > { %v1777_v34 = vpop.f32.mrf.mxu0  ;;  %v1779_v35 = vpop.f32.mrf.mxu1 }
 0x260   : > { %2181 = vst [vmem:[#allocation23_spill] sm:$0xff] %v1779_v35  ;;  %v660_v22 = vmax.f32 %v658_v52, %v1777_v34  ;;  %v697_v41 = vmax.f32 %v695_v59, %v1779_v35 }
 0x267   : > { %v1792_v55 = vpop.f32.mrf.mxu0  ;;  %v1794_v56 = vpop.f32.mrf.mxu1 }
 0x268   : > { %2183 = vst [vmem:[#allocation25_spill] sm:$0xff] %v1794_v56  ;;  %v661_v58 = vmax.f32 %v659_v5, %v1792_v55  ;;  %v698_v59 = vmax.f32 %v696_v57, %v1794_v56  ;;  %v554_v56 = vpop.f32.mrf.mxu2 }
 0x26f   : > { %v1818_v13 = vpop.f32.mrf.mxu0  ;;  %v1820_v36 = vpop.f32.mrf.mxu1 }
 0x270   : > { %v662_v42 = vmax.f32 %v660_v22, %v1818_v13  ;;  %v699_v43 = vmax.f32 %v697_v41, %v1820_v36 }
 0x272   : > { %v664_v52 = vmax.f32 %v662_v42, %v1712_v2  ;;  %v701_v22 = vmax.f32 %v699_v43, %v1714_v3  ;;  %v1846_v43 = vpop.f32.mrf.mxu3 }
 0x274   : > { %v666_v39 = vmax.f32 %v664_v52, %v1728_v10  ;;  %v703_v42 = vmax.f32 %v701_v22, %v1730_v11 }
 0x276   : > { %v668_v32 = vmax.f32 %v666_v39, %v1748_v20  ;;  %v705_v52 = vmax.f32 %v703_v42, %v1750_v21 }
 0x277   : > { %v524_v40 = vpop.f32.mrf.mxu0  ;;  %v613_v35 = vpop.f32.mrf.mxu1 }
 0x278   : > { %v663_v16 = vmax.f32 %v661_v58, %v524_v40  ;;  %v700_v41 = vmax.f32 %v698_v59, %v613_v35  ;;  %v670_v22 = vmax.f32 %v668_v32, %v1767_v29  ;;  %v707_v39 = vmax.f32 %v705_v52, %v1769_v30 }
 0x27a   : > { %v665_v54 = vmax.f32 %v663_v16, %v1720_v6  ;;  %v702_v51 = vmax.f32 %v700_v41, %v1722_v7 }
 0x27c   : > { %v667_v5 = vmax.f32 %v665_v54, %v1736_v14  ;;  %v704_v57 = vmax.f32 %v702_v51, %v1742_v17  ;;  %v672_v51 = vmax.f32 %v670_v22, %v1802_v38 }
 0x27e   : > { %v669_v58 = vmax.f32 %v667_v5, %v1759_v25  ;;  %v706_v59 = vmax.f32 %v704_v57, %v1761_v26  ;;  %v709_v5 = vmax.f32 %v707_v39, %v1808_v63  ;;  %v674_v3 = vmax.f32 %v672_v51, %v552_v61  ;;  %v1859_v57 = vpop.f32.mrf.mxu3 }
 0x280   : > { %v671_v16 = vmax.f32 %v669_v58, %v1775_v33  ;;  %v708_v41 = vmax.f32 %v706_v59, %v1783_v37  ;;  %v711_v59 = vmax.f32 %v709_v5, %v1846_v43 }
 0x282   : > { %v673_v54 = vmax.f32 %v671_v16, %v1828_v9  ;;  %v710_v7 = vmax.f32 %v708_v41, %v1834_v1 }
 0x284   : > { %v675_v42 = vmax.f32 %v673_v54, %v554_v56  ;;  %v712_v32 = vmax.f32 %v710_v7, %v1859_v57 }
 0x286   : > { %v676_v58 = vmax.f32 %v674_v3, %v675_v42  ;;  %v713_v17 = vmax.f32 %v711_v59, %v712_v32 }
 0x288   : > { %v677_v52 = vrot.slane %v676_v58, 4  ;;  %v714_v11 = vrot.slane %v713_v17, 4 }
 0x28a   : > { %v678_v16 = vmax.f32 %v676_v58, %v677_v52  ;;  %v715_v26 = vmax.f32 %v713_v17, %v714_v11 }
 0x28c   : > { %v679_v22 = vrot.slane %v678_v16, 2  ;;  %v716_v37 = vrot.slane %v715_v26, 2 }
 0x28e   : > { %v680_v30 = vmax.f32 %v678_v16, %v679_v22  ;;  %v717_v41 = vmax.f32 %v715_v26, %v716_v37 }
 0x290   : > { %v681_v54 = vrot.slane %v680_v30, 1  ;;  %v718_v1 = vrot.slane %v717_v41, 1 }
 0x292   : > { %v1863_v39 = vmax.f32 %v680_v30, %v681_v54  ;;  %v1865_v51 = vmax.f32 %v717_v41, %v718_v1 }
 0x294   : > { %v752_v3 = vsub.f32 %v1777_v34, %v1863_v39  ;;  %v754_v7 = vsub.f32 %v1792_v55, %v1863_v39  ;;  %v756_v42 = vsub.f32 %v1818_v13, %v1863_v39  ;;  %v758_v11 = vsub.f32 %v524_v40, %v1863_v39 }
 0x295   : > { %v757_v17 = vsub.f32 %v1820_v36, %v1865_v51  ;;  %v759_v26 = vsub.f32 %v613_v35, %v1865_v51  ;;  %v780_v34 = vsub.f32 %v552_v61, %v1863_v39  ;;  %v782_v55 = vsub.f32 %v554_v56, %v1863_v39  ;;  %v1893_v56 = vld [vmem:[#allocation3] sm:$0x77] }
 0x296   : > { %v1877_v30 = vpack.c.bf16 %v754_v7, %v752_v3  ;;  %v1879_v1 = vpack.c.bf16 %v758_v11, %v756_v42  ;;  %v748_v40 = vsub.f32 %v1763_v27, %v1863_v39  ;;  %v750_v36 = vsub.f32 %v1771_v31, %v1863_v39 }
 0x297   : > { %v1881_v37 = vpack.c.bf16 %v759_v26, %v757_v17  ;;  %v814_v5 = vpack.c.bf16 %v782_v55, %v780_v34  ;;  %v744_v59 = vsub.f32 %v1744_v18, %v1863_v39  ;;  %v746_v52 = vsub.f32 %v1755_v23, %v1863_v39 }
 0x298   : > { %v798_v61 = vpack.c.bf16 %v750_v36, %v748_v40  ;;  %v740_v16 = vsub.f32 %v1732_v12, %v1863_v39  ;;  %v742_v27 = vsub.f32 %v1738_v15, %v1863_v39  ;;  %v1042_v41 = vunpack.c.l.b16 %v1893_v56 }
 0x299   : > { %v876_v32 = vunpack.c.l.bf16 %v814_v5  ;;  %v878_v13 = vunpack.c.h.bf16 %v814_v5  ;;  %v796_v31 = vpack.c.bf16 %v746_v52, %v744_v59  ;;  %v736_v23 = vsub.f32 %v1716_v4, %v1863_v39 }
 0x29a   : > { %v844_v22 = vunpack.c.l.bf16 %v798_v61  ;;  %v846_v54 = vunpack.c.h.bf16 %v798_v61  ;;  %v738_v3 = vsub.f32 %v1724_v8, %v1863_v39  ;;  %v794_v7 = vpack.c.bf16 %v742_v27, %v740_v16 }
 0x29b   : > { %v1000_v35 = vmul.f32 1.442695, %v876_v32  ;;  %v1004_v58 = vmul.f32 1.442695, %v878_v13  ;;  %v840_v42 = vunpack.c.l.bf16 %v796_v31  ;;  %v842_v17 = vunpack.c.h.bf16 %v796_v31 }
 0x29c   : > { %v936_v12 = vmul.f32 1.442695, %v844_v22  ;;  %v1904_v26 = vpack.c.b16 %v1042_v41, %v1042_v41  ;;  %v720_v15 = vsub.f32 %v1676_v44, %v1863_v39  ;;  %v722_v34 = vsub.f32 %v1682_v46, %v1863_v39 }
 0x29d   : > { %1322 = vpow2.f32 %v1000_v35  ;;  %v724_v55 = vsub.f32 %v1688_v49, %v1863_v39  ;;  %v726_v4 = vsub.f32 %v1692_v50, %v1863_v39  ;;  %v728_v8 = vsub.f32 %v1696_v53, %v1863_v39 }
 0x29e   : > { %1324 = vpow2.f32 %v1004_v58  ;;  %v732_v5 = vsub.f32 %v1704_v62, %v1863_v39  ;;  %v734_v32 = vsub.f32 %v1708_v0, %v1863_v39  ;;  %v940_v13 = vmul.f32 1.442695, %v846_v54 }
 0x29f   : > { %v792_v44 = vpack.c.bf16 %v738_v3, %v736_v23  ;;  %v836_v40 = vunpack.c.l.bf16 %v794_v7  ;;  %v928_v36 = vmul.f32 1.442695, %v840_v42  ;;  %v730_v49 = vsub.f32 %v1700_v60, %v1863_v39 }
 0x2a0   : > { %v838_v35 = vunpack.c.h.bf16 %v794_v7  ;;  %v932_v58 = vmul.f32 1.442695, %v842_v17  ;;  %1326 = vpow2.f32 %v936_v12  ;;  %v764_v62 = vsub.f32 %v1728_v10, %v1863_v39 }
 0x2a1   : > { %v766_v0 = vsub.f32 %v1736_v14, %v1863_v39  ;;  %v768_v59 = vsub.f32 %v1748_v20, %v1863_v39  ;;  %v781_v60 = vsub.f32 %v1846_v43, %v1865_v51  ;;  %v783_v52 = vsub.f32 %v1859_v57, %v1865_v51 }
 0x2a2   : > { %1328 = vpow2.f32 %v940_v13  ;;  %v790_v61 = vpack.c.bf16 %v734_v32, %v732_v5  ;;  %v832_v16 = vunpack.c.l.bf16 %v792_v44  ;;  %v920_v27 = vmul.f32 1.442695, %v836_v40 }
 0x2a3   : > { %v1323_v18 = vpop.eup %1322  ;;  %1330 = vpow2.f32 %v928_v36  ;;  %v770_v31 = vsub.f32 %v1759_v25, %v1863_v39  ;;  %v834_v22 = vunpack.c.h.bf16 %v792_v44  ;;  %v924_v41 = vmul.f32 1.442695, %v838_v35  ;;  %v2186_v36 = vld [vmem:[#allocation8_spill] sm:$0xff] }
 0x2a4   : > { %v1325_v11 = vpop.eup %1324  ;;  %1332 = vpow2.f32 %v932_v58  ;;  %v772_v54 = vsub.f32 %v1767_v29, %v1863_v39  ;;  %v774_v43 = vsub.f32 %v1775_v33, %v1863_v39  ;;  %v776_v57 = vsub.f32 %v1802_v38, %v1863_v39  ;;  %v2185_v38 = vld [vmem:[#allocation7_spill] sm:$0xff] }
 0x2a5   : > { %v1038_v46 = vpack.c.bf16 %v1325_v11, %v1323_v18  ;;  %v778_v18 = vsub.f32 %v1828_v9, %v1863_v39  ;;  %v815_v3 = vpack.c.bf16 %v783_v52, %v781_v60  ;;  %v788_v17 = vpack.c.bf16 %v730_v49, %v728_v8  ;;  %v2189_v11 = vld [vmem:[#allocation10_spill] sm:$0xff] }
 0x2a6   : > { %v1327_v23 = vpop.eup %1326  ;;  %v828_v12 = vunpack.c.l.bf16 %v790_v61  ;;  %v912_v5 = vmul.f32 1.442695, %v832_v16  ;;  %1334 = vpow2.f32 %v920_v27  ;;  %v830_v9 = vunpack.c.h.bf16 %v790_v61  ;;  %v2187_v61 = vld [vmem:[#allocation22_spill] sm:$0xff] }
 0x2a7   : > { %1061 = vmatpush.bf16.msrb.mxu3 %v1038_v46  ;;  %v916_v44 = vmul.f32 1.442695, %v834_v22  ;;  %1336 = vpow2.f32 %v924_v41  ;;  %v745_v35 = vsub.f32 %v1746_v19, %v1865_v51  ;;  %v747_v8 = vsub.f32 %v1757_v24, %v1865_v51  ;;  %v2188_v19 = vld [vmem:[#allocation9_spill] sm:$0xff]  ;;  %v2190_v46 = vld [vmem:[#allocation11_spill] sm:$0xff] }
 0x2a8   : > { %v1329_v32 = vpop.eup %1328  ;;  %v877_v60 = vunpack.c.l.bf16 %v815_v3  ;;  %v749_v52 = vsub.f32 %v1765_v28, %v1865_v51  ;;  %v751_v16 = vsub.f32 %v2187_v61, %v1865_v51  ;;  %v784_v27 = vpack.c.bf16 %v722_v34, %v720_v15 }
 0x2a9   : > { %v1331_v40 = vpop.eup %1330  ;;  %v1022_v49 = vpack.c.bf16 %v1329_v32, %v1327_v23  ;;  %v786_v22 = vpack.c.bf16 %v726_v4, %v724_v55  ;;  %v824_v41 = vunpack.c.l.bf16 %v788_v17  ;;  %v904_v42 = vmul.f32 1.442695, %v828_v12  ;;  %v2191_v4 = vld [vmem:[#allocation13_spill] sm:$0xff] }
 0x2aa   : > { %v1333_v58 = vpop.eup %1332  ;;  %1338 = vpow2.f32 %v912_v5  ;;  %v826_v13 = vunpack.c.h.bf16 %v788_v17  ;;  %v908_v24 = vmul.f32 1.442695, %v830_v9  ;;  %v879_v32 = vunpack.c.h.bf16 %v815_v3 }
 0x2ab   : > { %1048 = vmatpush.bf16.msrb.mxu2 %v1022_v49  ;;  %1340 = vpow2.f32 %v916_v44  ;;  %v1020_v15 = vpack.c.bf16 %v1333_v58, %v1331_v40  ;;  %v1002_v55 = vmul.f32 1.442695, %v877_v60  ;;  %v737_v12 = vsub.f32 %v2191_v4, %v1865_v51  ;;  %v2192_v40 = vld [vmem:[#allocation17_spill] sm:$0xff] }
 0x2ac   : > { %v1335_v23 = vpop.eup %1334  ;;  %v1972_v5 = vpack.c.bf16 %v747_v8, %v745_v35  ;;  %v816_v49 = vunpack.c.l.bf16 %v784_v27  ;;  %v799_v17 = vpack.c.bf16 %v751_v16, %v749_v52  ;;  %v820_v9 = vunpack.c.l.bf16 %v786_v22  ;;  %v2193_v35 = vld [vmem:[#allocation18_spill] sm:$0xff]  ;;  %v2194_v16 = vld [vmem:[#allocation15_spill] sm:$0xff] }
 0x2ad   : > { %v1337_v34 = vpop.eup %1336  ;;  %v896_v44 = vmul.f32 1.442695, %v824_v41  ;;  %1342 = vpow2.f32 %v904_v42  ;;  %v812_v3 = vpack.c.bf16 %v778_v18, %v776_v57  ;;  %v822_v7 = vunpack.c.h.bf16 %v786_v22 }
 0x2ae   : > { %v900_v53 = vmul.f32 1.442695, %v826_v13  ;;  %1344 = vpow2.f32 %v908_v24  ;;  %v1006_v61 = vmul.f32 1.442695, %v879_v32  ;;  %v741_v58 = vsub.f32 %v2192_v40, %v1865_v51 }
 0x2af   : > { %1049 = vmatpush.bf16.msrb.mxu2 %v1020_v15  ;;  %v818_v60 = vunpack.c.h.bf16 %v784_v27  ;;  %v1018_v28 = vpack.c.bf16 %v1337_v34, %v1335_v23  ;;  %1346 = vpow2.f32 %v1002_v55  ;;  %v743_v8 = vsub.f32 %v2193_v35, %v1865_v51 }
 0x2b0   : > { %v1339_v50 = vpop.eup %1338  ;;  %v841_v52 = vunpack.c.l.bf16 %v1972_v5  ;;  %v880_v42 = vmul.f32 1.442695, %v816_v49  ;;  %v810_v57 = vpack.c.bf16 %v774_v43, %v772_v54  ;;  %v845_v18 = vunpack.c.l.bf16 %v799_v17 }
 0x2b1   : > { %v1341_v4 = vpop.eup %1340  ;;  %v888_v13 = vmul.f32 1.442695, %v820_v9  ;;  %1348 = vpow2.f32 %v896_v44  ;;  %v739_v27 = vsub.f32 %v2194_v16, %v1865_v51  ;;  %v872_v22 = vunpack.c.l.bf16 %v812_v3 }
 0x2b2   : > { %v892_v41 = vmul.f32 1.442695, %v822_v7  ;;  %1350 = vpow2.f32 %v900_v53  ;;  %v847_v23 = vunpack.c.h.bf16 %v799_v17  ;;  %v884_v32 = vmul.f32 1.442695, %v818_v60 }
 0x2b3   : > { %1050 = vmatpush.bf16.msrb.mxu2 %v1018_v28  ;;  %v1343_v24 = vpop.eup %1342  ;;  %1352 = vpow2.f32 %v1006_v61  ;;  %v1016_v15 = vpack.c.bf16 %v1341_v4, %v1339_v50  ;;  %v795_v34 = vpack.c.bf16 %v743_v8, %v741_v58  ;;  %v874_v55 = vunpack.c.h.bf16 %v812_v3 }
 0x2b4   : > { %v1345_v29 = vpop.eup %1344  ;;  %1354 = vpow2.f32 %v880_v42  ;;  %v930_v33 = vmul.f32 1.442695, %v841_v52  ;;  %v808_v54 = vpack.c.bf16 %v770_v31, %v768_v59  ;;  %v868_v43 = vunpack.c.l.bf16 %v810_v57 }
 0x2b5   : > { %1356 = vpow2.f32 %v888_v13  ;;  %v938_v53 = vmul.f32 1.442695, %v845_v18  ;;  %v1993_v7 = vpop.eup %1346  ;;  %v769_v50 = vsub.f32 %v1750_v21, %v1865_v51  ;;  %v870_v28 = vunpack.c.h.bf16 %v810_v57 }
 0x2b6   : > { %1358 = vpow2.f32 %v892_v41  ;;  %v992_v61 = vmul.f32 1.442695, %v872_v22  ;;  %v843_v17 = vunpack.c.h.bf16 %v1972_v5  ;;  %v942_v20 = vmul.f32 1.442695, %v847_v23 }
 0x2b7   : > { %1051 = vmatpush.bf16.msrb.mxu2 %v1016_v15  ;;  %v1349_v49 = vpop.eup %1348  ;;  %1360 = vpow2.f32 %v884_v32  ;;  %v1014_v9 = vpack.c.bf16 %v1345_v29, %v1343_v24  ;;  %v793_v59 = vpack.c.bf16 %v739_v27, %v737_v12  ;;  %v837_v31 = vunpack.c.l.bf16 %v795_v34  ;;  %v2195_v12 = vld [vmem:[#allocation21_spill] sm:$0xff] }
 0x2b8   : > { %v1351_v25 = vpop.eup %1350  ;;  %1362 = vpow2.f32 %v930_v33  ;;  %v996_v44 = vmul.f32 1.442695, %v874_v55  ;;  %v806_v40 = vpack.c.bf16 %v766_v0, %v764_v62  ;;  %v864_v58 = vunpack.c.l.bf16 %v808_v54 }
 0x2b9   : > { %v1998_v3 = vpop.eup %1352  ;;  %1364 = vpow2.f32 %v938_v53  ;;  %v984_v5 = vmul.f32 1.442695, %v868_v43  ;;  %v773_v4 = vsub.f32 %v2195_v12, %v1865_v51  ;;  %v866_v35 = vunpack.c.h.bf16 %v808_v54  ;;  %v2210_v12 = vld [vmem:[#allocation19_spill] sm:$0xff] }
 0x2ba   : > { %v2006_v60 = vpop.eup %1354  ;;  %v988_v8 = vmul.f32 1.442695, %v870_v28  ;;  %1366 = vpow2.f32 %v992_v61  ;;  %v839_v42 = vunpack.c.h.bf16 %v795_v34  ;;  %v934_v57 = vmul.f32 1.442695, %v843_v17 }
 0x2bb   : > { %1052 = vmatpush.bf16.msrb.mxu2 %v1014_v9  ;;  %v1357_v52 = vpop.eup %1356  ;;  %1368 = vpow2.f32 %v942_v20  ;;  %v1012_v10 = vpack.c.bf16 %v1351_v25, %v1349_v49  ;;  %v2196_v14 = vsub.f32 %v2189_v11, %v1865_v51  ;;  %v2197_v62 = vsub.f32 %v2190_v46, %v1865_v51 }
 0x2bc   : > { %v1359_v18 = vpop.eup %1358  ;;  %v833_v13 = vunpack.c.l.bf16 %v793_v59  ;;  %v922_v16 = vmul.f32 1.442695, %v837_v31  ;;  %1370 = vpow2.f32 %v996_v44  ;;  %v2198_v22 = vsub.f32 %v1712_v2, %v1863_v39 }
 0x2bd   : > { %v791_v0 = vpack.c.bf16 %v2197_v62, %v2196_v14  ;;  %v1361_v27 = vpop.eup %1360  ;;  %v2199_v41 = vsub.f32 %v1720_v6, %v1863_v39  ;;  %v860_v23 = vunpack.c.l.bf16 %v806_v40  ;;  %v976_v32 = vmul.f32 1.442695, %v864_v58 }
 0x2be   : > { %1372 = vpow2.f32 %v984_v5  ;;  %v2022_v11 = vpop.eup %1362  ;;  %v777_v46 = vsub.f32 %v1808_v63, %v1865_v51  ;;  %v862_v15 = vunpack.c.h.bf16 %v806_v40  ;;  %v980_v29 = vmul.f32 1.442695, %v866_v35  ;;  %v2208_v63 = vld [vmem:[#allocation20_spill] sm:$0xff] }
 0x2bf   : > { %v804_v24 = vpack.c.bf16 %v2199_v41, %v2198_v22  ;;  %1053 = vmatpush.bf16.msrb.mxu2 %v1012_v10  ;;  %1374 = vpow2.f32 %v988_v8  ;;  %v1365_v34 = vpop.eup %1364  ;;  %v835_v55 = vunpack.c.h.bf16 %v793_v59  ;;  %v926_v33 = vmul.f32 1.442695, %v839_v42  ;;  %v2204_v42 = vld [vmem:[#allocation26_spill] sm:$0xff] }
 0x2c0   : > { %1376 = vpow2.f32 %v934_v57  ;;  %v1010_v2 = vpack.c.bf16 %v1359_v18, %v1357_v52  ;;  %v1367_v54 = vpop.eup %1366  ;;  %v2200_v6 = vsub.f32 %v2186_v36, %v1865_v51  ;;  %v2201_v39 = vsub.f32 %v2188_v19, %v1865_v51 }
 0x2c1   : > { %v829_v53 = vunpack.c.l.bf16 %v791_v0  ;;  %v914_v28 = vmul.f32 1.442695, %v833_v13  ;;  %1378 = vpow2.f32 %v922_v16  ;;  %v1369_v61 = vpop.eup %1368  ;;  %v2202_v49 = vsub.f32 %v1686_v48, %v1865_v51 }
 0x2c2   : > { %v2032_v43 = vpack.c.bf16 %v2201_v39, %v2200_v6  ;;  %v2203_v17 = vsub.f32 %v2185_v38, %v1865_v51  ;;  %v856_v9 = vunpack.c.l.bf16 %v804_v24  ;;  %v968_v25 = vmul.f32 1.442695, %v860_v23  ;;  %v1371_v36 = vpop.eup %1370 }
 0x2c3   : > { %1380 = vpow2.f32 %v976_v32  ;;  %1054 = vmatpush.bf16.msrb.mxu2 %v1010_v2  ;;  %v858_v19 = vunpack.c.h.bf16 %v804_v24  ;;  %v831_v59 = vunpack.c.h.bf16 %v791_v0  ;;  %v972_v31 = vmul.f32 1.442695, %v862_v15 }
 0x2c4   : > { %v2040_v20 = vpack.c.bf16 %v2203_v17, %v2202_v49  ;;  %1382 = vpow2.f32 %v980_v29  ;;  %v1373_v44 = vpop.eup %1372  ;;  %v918_v40 = vmul.f32 1.442695, %v835_v55  ;;  %v1036_v58 = vpack.c.bf16 %v1371_v36, %v1367_v54 }
 0x2c5   : > { %1384 = vpow2.f32 %v926_v33  ;;  %v1008_v48 = vpack.c.bf16 %v1361_v27, %v2006_v60  ;;  %v1375_v5 = vpop.eup %1374  ;;  %v825_v38 = vunpack.c.l.bf16 %v2032_v43  ;;  %v906_v35 = vmul.f32 1.442695, %v829_v53 }
 0x2c6   : > { %1386 = vpow2.f32 %v914_v28  ;;  %v1023_v8 = vpack.c.bf16 %v1369_v61, %v1365_v34  ;;  %v1377_v52 = vpop.eup %1376  ;;  %v779_v57 = vsub.f32 %v2204_v42, %v1865_v51  ;;  %v852_v10 = vunpack.c.l.bf16 %v1879_v1  ;;  %1062 = vmatpush.bf16.msrb.mxu3 %v1036_v58 }
 0x2c7   : > { %v960_v18 = vmul.f32 1.442695, %v856_v9  ;;  %1388 = vpow2.f32 %v968_v25  ;;  %1055 = vmatpush.bf16.msrb.mxu2 %v1008_v48  ;;  %v1379_v14 = vpop.eup %1378  ;;  %v2205_v60 = vsub.f32 %v1678_v45, %v1865_v51  ;;  %v2206_v62 = vsub.f32 %v1684_v47, %v1865_v51 }
 0x2c8   : > { %v854_v13 = vunpack.c.h.bf16 %v1879_v1  ;;  %v964_v16 = vmul.f32 1.442695, %v858_v19  ;;  %1390 = vpow2.f32 %v972_v31  ;;  %v827_v22 = vunpack.c.h.bf16 %v2032_v43  ;;  %v2207_v1 = vld [vmem:[#allocation24_spill] sm:$0xff] }
 0x2c9   : > { %v785_v0 = vpack.c.bf16 %v2206_v62, %v2205_v60  ;;  %v1381_v27 = vpop.eup %1380  ;;  %v910_v41 = vmul.f32 1.442695, %v831_v59  ;;  %1392 = vpow2.f32 %v918_v40  ;;  %v1034_v24 = vpack.c.bf16 %v1375_v5, %v1373_v44 }
 0x2ca   : > { %v1383_v23 = vpop.eup %1382  ;;  %v821_v32 = vunpack.c.l.bf16 %v2040_v20  ;;  %v898_v15 = vmul.f32 1.442695, %v825_v38  ;;  %1394 = vpow2.f32 %v906_v35  ;;  %1056 = vmatmul.bf16.vlgmr.msrb.gmra.mxu2 %v1904_v26  ;;  %v1021_v45 = vpack.c.bf16 %v1377_v52, %v2022_v11 }
 0x2cb   : > { %1074 = vmatpush.bf16.msra.mxu2 %v1023_v8  ;;  %v1385_v47 = vpop.eup %1384  ;;  %v775_v29 = vsub.f32 %v2207_v1, %v1865_v51  ;;  %v848_v34 = vunpack.c.l.bf16 %v1877_v30  ;;  %v952_v55 = vmul.f32 1.442695, %v852_v10  ;;  %1396 = vpow2.f32 %v960_v18  ;;  %1063 = vmatpush.bf16.msrb.mxu3 %v1034_v24  ;;  %v2209_v8 = vld [vmem:[#allocation16_spill] sm:$0xff] }
 0x2cc   : > { %v1387_v33 = vpop.eup %1386  ;;  %v813_v2 = vpack.c.bf16 %v779_v57, %v777_v46  ;;  %v850_v54 = vunpack.c.h.bf16 %v1877_v30  ;;  %v956_v6 = vmul.f32 1.442695, %v854_v13  ;;  %1398 = vpow2.f32 %v964_v16 }
 0x2cd   : > { %v1389_v11 = vpop.eup %1388  ;;  %v823_v39 = vunpack.c.h.bf16 %v2040_v20  ;;  %v902_v43 = vmul.f32 1.442695, %v827_v22  ;;  %1400 = vpow2.f32 %v910_v41  ;;  %v1032_v53 = vpack.c.bf16 %v1383_v23, %v1381_v27  ;;  %v2211_v41 = vld [vmem:[#allocation12_spill] sm:$0xff]  ;;  %v2212_v23 = vld [vmem:[#allocation14_spill] sm:$0xff] }
 0x2ce   : > { %v1391_v28 = vpop.eup %1390  ;;  %v817_v61 = vunpack.c.l.bf16 %v785_v0  ;;  %v890_v49 = vmul.f32 1.442695, %v821_v32  ;;  %1402 = vpow2.f32 %v898_v15  ;;  %v1019_v17 = vpack.c.bf16 %v1385_v47, %v1379_v14 }
 0x2cf   : > { %1075 = vmatpush.bf16.msra.mxu2 %v1021_v45  ;;  %v1393_v9 = vpop.eup %1392  ;;  %v771_v46 = vsub.f32 %v2208_v63, %v1865_v51  ;;  %v819_v25 = vunpack.c.h.bf16 %v785_v0  ;;  %v944_v30 = vmul.f32 1.442695, %v848_v34  ;;  %1404 = vpow2.f32 %v952_v55  ;;  %1064 = vmatpush.bf16.msrb.mxu3 %v1032_v53 }
 0x2d0   : > { %v1395_v36 = vpop.eup %1394  ;;  %v811_v20 = vpack.c.bf16 %v775_v29, %v773_v4  ;;  %v873_v19 = vunpack.c.l.bf16 %v813_v2  ;;  %v948_v59 = vmul.f32 1.442695, %v850_v54  ;;  %1406 = vpow2.f32 %v956_v6 }
 0x2d1   : > { %v1397_v31 = vpop.eup %1396  ;;  %v875_v44 = vunpack.c.h.bf16 %v813_v2  ;;  %v894_v40 = vmul.f32 1.442695, %v823_v39  ;;  %1408 = vpow2.f32 %v902_v43  ;;  %v1030_v58 = vpack.c.bf16 %v1391_v28, %v1389_v11 }
 0x2d2   : > { %v1399_v48 = vpop.eup %1398  ;;  %v882_v5 = vmul.f32 1.442695, %v817_v61  ;;  %1410 = vpow2.f32 %v890_v49  ;;  %v1017_v38 = vpack.c.bf16 %v1393_v9, %v1387_v33  ;;  %v765_v52 = vsub.f32 %v2209_v8, %v1865_v51 }
 0x2d3   : > { %1076 = vmatpush.bf16.msra.mxu2 %v1019_v17  ;;  %v1401_v35 = vpop.eup %1400  ;;  %v767_v4 = vsub.f32 %v2210_v12, %v1865_v51  ;;  %v886_v42 = vmul.f32 1.442695, %v819_v25  ;;  %1412 = vpow2.f32 %v944_v30  ;;  %1065 = vmatpush.bf16.msrb.mxu3 %v1030_v58  ;;  %v809_v10 = vpack.c.bf16 %v771_v46, %v769_v50  ;;  %v2213_v25 = vld [vmem:[#allocation23_spill] sm:$0xff] }
 0x2d4   : > { %v1403_v57 = vpop.eup %1402  ;;  %v869_v18 = vunpack.c.l.bf16 %v811_v20  ;;  %1414 = vpow2.f32 %v948_v59  ;;  %v994_v14 = vmul.f32 1.442695, %v873_v19  ;;  %v871_v62 = vunpack.c.h.bf16 %v811_v20 }
 0x2d5   : > { %v1405_v60 = vpop.eup %1404  ;;  %1416 = vpow2.f32 %v894_v40  ;;  %v998_v0 = vmul.f32 1.442695, %v875_v44  ;;  %v1028_v13 = vpack.c.bf16 %v1399_v48, %v1397_v31  ;;  %v1015_v27 = vpack.c.bf16 %v1401_v35, %v1395_v36  ;;  %v2214_v36 = vld [vmem:[#allocation25_spill] sm:$0xff] }
 0x2d6   : > { %v1407_v16 = vpop.eup %1406  ;;  %1418 = vpow2.f32 %v882_v5  ;;  %v761_v24 = vsub.f32 %v2211_v41, %v1865_v51  ;;  %v763_v21 = vsub.f32 %v2212_v23, %v1865_v51  ;;  %v807_v32 = vpack.c.bf16 %v767_v4, %v765_v52 }
 0x2d7   : > { %1077 = vmatpush.bf16.msra.mxu2 %v1017_v38  ;;  %v1409_v22 = vpop.eup %1408  ;;  %1420 = vpow2.f32 %v886_v42  ;;  %1066 = vmatpush.bf16.msrb.mxu3 %v1028_v13  ;;  %v865_v15 = vunpack.c.l.bf16 %v809_v10  ;;  %v986_v45 = vmul.f32 1.442695, %v869_v18  ;;  %v867_v1 = vunpack.c.h.bf16 %v809_v10 }
 0x2d8   : > { %v1411_v50 = vpop.eup %1410  ;;  %1422 = vpow2.f32 %v994_v14  ;;  %v990_v29 = vmul.f32 1.442695, %v871_v62  ;;  %v1026_v34 = vpack.c.bf16 %v1407_v16, %v1405_v60  ;;  %v1013_v33 = vpack.c.bf16 %v1409_v22, %v1403_v57 }
 0x2d9   : > { %v1413_v47 = vpop.eup %1412  ;;  %1424 = vpow2.f32 %v998_v0  ;;  %v1043_v54 = vunpack.c.h.b16 %v1893_v56  ;;  %v805_v11 = vpack.c.bf16 %v763_v21, %v761_v24  ;;  %v861_v39 = vunpack.c.l.bf16 %v807_v32 }
 0x2da   : > { %v1415_v55 = vpop.eup %1414  ;;  %v978_v43 = vmul.f32 1.442695, %v865_v15  ;;  %1426 = vpow2.f32 %v986_v45  ;;  %v863_v28 = vunpack.c.h.bf16 %v807_v32  ;;  %v982_v61 = vmul.f32 1.442695, %v867_v1 }
 0x2db   : > { %1078 = vmatpush.bf16.msra.mxu2 %v1015_v27  ;;  %v1417_v2 = vpop.eup %1416  ;;  %1067 = vmatpush.bf16.msrb.mxu3 %v1026_v34  ;;  %1428 = vpow2.f32 %v990_v29  ;;  %v1024_v49 = vpack.c.bf16 %v1415_v55, %v1413_v47  ;;  %v1039_v9 = vpack.c.bf16 %v1998_v3, %v1993_v7  ;;  %v753_v56 = vsub.f32 %v2213_v25, %v1865_v51 }
 0x2dc   : > { %v1419_v6 = vpop.eup %1418  ;;  %v1011_v63 = vpack.c.bf16 %v1417_v2, %v1411_v50  ;;  %v1045_v30 = vpack.c.b16 %v1043_v54, %v1043_v54  ;;  %v755_v20 = vsub.f32 %v2214_v36, %v1865_v51  ;;  %v857_v19 = vunpack.c.l.bf16 %v805_v11 }
 0x2dd   : > { %v1421_v53 = vpop.eup %1420  ;;  %v970_v59 = vmul.f32 1.442695, %v861_v39  ;;  %1430 = vpow2.f32 %v978_v43  ;;  %v859_v31 = vunpack.c.h.bf16 %v805_v11  ;;  %v974_v44 = vmul.f32 1.442695, %v863_v28 }
 0x2de   : > { %v1423_v17 = vpop.eup %1422  ;;  %1432 = vpow2.f32 %v982_v61  ;;  %v1009_v3 = vpack.c.bf16 %v1421_v53, %v1419_v6  ;;  %v801_v48 = vpack.c.bf16 %v755_v20, %v753_v56  ;;  %v853_v5 = vunpack.c.l.bf16 %v1881_v37  ;;  %v1110_v53 = vpop.permute.xlu1 %1109 }
 0x2df   : > { %1079 = vmatpush.bf16.msra.mxu2 %v1013_v33  ;;  %v1425_v46 = vpop.eup %1424  ;;  %1068 = vmatpush.bf16.msrb.mxu3 %v1024_v49  ;;  %v962_v38 = vmul.f32 1.442695, %v857_v19  ;;  %1434 = vpow2.f32 %v970_v59  ;;  %v855_v51 = vunpack.c.h.bf16 %v1881_v37  ;;  %v966_v35 = vmul.f32 1.442695, %v859_v31 }
 0x2e0   : > { %v1427_v40 = vpop.eup %1426  ;;  %v1037_v7 = vpack.c.bf16 %v1425_v46, %v1423_v17  ;;  %1436 = vpow2.f32 %v974_v44  ;;  %v849_v4 = vunpack.c.l.bf16 %v801_v48  ;;  %v954_v42 = vmul.f32 1.442695, %v853_v5 }
 0x2e1   : > { %v1429_v58 = vpop.eup %1428  ;;  %1438 = vpow2.f32 %v962_v38  ;;  %v851_v57 = vunpack.c.h.bf16 %v801_v48  ;;  %v958_v10 = vmul.f32 1.442695, %v855_v51 }
 0x2e2   : > { %1069 = vmatmul.bf16.vlgmr.msrb.gmra.mxu3 %v1045_v30  ;;  %v1035_v52 = vpack.c.bf16 %v1429_v58, %v1427_v40  ;;  %1440 = vpow2.f32 %v966_v35  ;;  %v946_v62 = vmul.f32 1.442695, %v849_v4 }
 0x2e3   : > { %1087 = vmatpush.bf16.msra.mxu3 %v1039_v9  ;;  %1080 = vmatpush.bf16.msra.mxu2 %v1011_v63  ;;  %v1431_v8 = vpop.eup %1430  ;;  %1442 = vpow2.f32 %v954_v42  ;;  %v950_v37 = vmul.f32 1.442695, %v851_v57 }
 0x2e4   : > { %v1433_v12 = vpop.eup %1432  ;;  %1444 = vpow2.f32 %v958_v10 }
 0x2e5   : > { %v1435_v18 = vpop.eup %1434  ;;  %v1033_v14 = vpack.c.bf16 %v1433_v12, %v1431_v8  ;;  %1446 = vpow2.f32 %v946_v62 }
 0x2e6   : > { %v1437_v60 = vpop.eup %1436  ;;  %1448 = vpow2.f32 %v950_v37 }
 0x2e7   : > { %1088 = vmatpush.bf16.msra.mxu3 %v1037_v7  ;;  %1081 = vmatpush.bf16.msra.mxu2 %v1009_v3  ;;  %v1439_v0 = vpop.eup %1438  ;;  %v1031_v13 = vpack.c.bf16 %v1437_v60, %v1435_v18 }
 0x2e8   : > { %v1441_v16 = vpop.eup %1440 }
 0x2e9   : > { %v1029_v27 = vpack.c.bf16 %v1441_v16, %v1439_v0 }
 0x2ea   : > { %1082 = vmatmul.bf16.vlgmr.msra.gmra.mxu2 %v1904_v26  ;;  %v1443_v26 = vpop.eup %1442 }
 0x2eb   : > { %1089 = vmatpush.bf16.msra.mxu3 %v1035_v52  ;;  %v1445_v22 = vpop.eup %1444 }
 0x2ec   : > { %v1447_v41 = vpop.eup %1446  ;;  %v1027_v24 = vpack.c.bf16 %v1445_v22, %v1443_v26 }
 0x2ed   : > { %v1449_v23 = vpop.eup %1448 }
 0x2ee   : > { %v1025_v21 = vpack.c.bf16 %v1449_v23, %v1447_v41 }
 0x2ef   : > { %1090 = vmatpush.bf16.msra.mxu3 %v1033_v14 }
 0x2f3   : > { %1091 = vmatpush.bf16.msra.mxu3 %v1031_v13 }
 0x2f7   : > { %1092 = vmatpush.bf16.msra.mxu3 %v1029_v27 }
 0x2fb   : > { %1093 = vmatpush.bf16.msra.mxu3 %v1027_v24 }
 0x2ff   : > { %1094 = vmatpush.bf16.msra.mxu3 %v1025_v21 }
 0x302   : > { %1095 = vmatmul.bf16.vlgmr.msra.gmra.mxu3 %v1045_v30 }
 0x34d   : > { %v1057_v50 = vpop.f32.mrf.mxu2 }
 0x355   : > { %v1059_v32 = vpop.f32.mrf.mxu2 }
 0x365   : > { %v1070_v15 = vpop.f32.mrf.mxu3 }
 0x366   : > { %v1071_v29 = vadd.f32 %v1070_v15, %v1057_v50 }
 0x368   : > { %1450 = vrcp.f32 %v1071_v29 }
 0x36d   : > { %v1083_v45 = vpop.f32.mrf.mxu2  ;;  %v1072_v47 = vpop.f32.mrf.mxu3 }
 0x36e   : > { %v1451_v33 = vpop.eup %1450 }
 0x36f   : > { %v1102_v2 = vperm.slane %v1451_v33, 4 }
 0x371   : > { %v1104_v39 = vmul.f32 %v1102_v2, %v1071_v29 }
 0x373   : > { %v1112_v61 = vadd.f32 %v1110_v53, %v1104_v39 }
 0x375   : > { %v1085_v1 = vpop.f32.mrf.mxu2 }
 0x385   : > { %v1096_v34 = vpop.f32.mrf.mxu3 }
 0x386   : > { %v1097_v55 = vadd.f32 %v1096_v34, %v1083_v45 }
 0x388   : > { %1452 = vrcp.f32 %v1097_v55 }
 0x38d   : > { %v1098_v54 = vpop.f32.mrf.mxu3 }
 0x38e   : > { %v1453_v6 = vpop.eup %1452 }
 0x38f   : > { %v1103_v11 = vperm.slane %v1453_v6, 4 }
 0x391   : > { %v1105_v43 = vmul.f32 %v1103_v11, %v1097_v55 }
 0x393   : > { %v1113_v28 = vadd.f32 %v1110_v53, %v1105_v43 }
 0x395   : > { %v1116_v49 = vrot.slane %v1113_v28, 4 }
 0x397   : > { %v1117_v17 = vsel %vm461_vm2, %v1112_v61, %v1116_v49 }
 0x398   : > { %1119 = vst [vmem:[%s258_s18] sm:$0xff] %v1117_v17 }
 0x399   : > { %1481 = shalt.err (!%p1478_p5)
}
 0x39a   : > { %1264 = dma.vmem_to_hbm [thread:$0]  (%p1610_p4), %s1137_s19, 128, %s1139_s20, %s1121_s24  }
 0x39b PF: > { %p1270_p6 = scmp.ge.s32.totalorder %s1532_s26, 2  ;;  %s1150_s12 = sand.u32 1, %s1512_s21  }
 0x39c   : > { %s1151_s15 = scalar_lea.sflag [#allocation5], %s1150_s12 }
 0x39d   : > { %p1267_p7 = pnand %p1270_p6, %p1617_p8 }
 0x39f   : > { %p1268_p9 = pneg %p1267_p7 }
 0x3a1   : > { %1507 = dma.done.wait (%p1268_p9), %s1151_s15, 128  }
 0x3a2   : > { %1509 = vsyncadd (%p1268_p9), %s1151_s15, 4294967168  ;;  %s19_s26 = sadd.s32 1, %s1532_s26   ;;  %s2215_s21 = smov %s1516_s22 }
 0x3a3   : > { %p16_p10 = scmp.ge.s32.totalorder %s19_s26, 4   ;;  %s2216_s22 = smov %s1520_s23 }
 0x3a4   : > { %s2217_s23 = smov %s1623_s10  ;;  %s2218_s24 = smov %s1528_s25 }
 0x3a5   : > { %s2219_s25 = smov %s2221_s29  ;;  %18 = sbr.rel (!%p16_p10) target bundleno = 4 (0x4), region = 80 }
 0x3aa   :  { %1157 = vsyncpa [#allocation5], 1 }
 0x3ab   :  { %1159 = vsyncpa [#allocation5 + $0x1], 1 }

</bundles_post_ra>
